<compile_context>
chip_gen: v7x
topology: tpu7x:2x2x1
jax: 0.10.0
libtpu: 0.0.40
codegen_flags: <defaults>
</compile_context>

<pallas_src>
import math
import functools

import jax
import jax.numpy as jnp
from jax.experimental import pallas as pl
from jax.experimental.pallas import tpu as pltpu

_LN_EPS = 1e-5  # nn.LayerNorm default


# ---------------------------------------------------------------------------
# Kernels
# ---------------------------------------------------------------------------
def _patch_embed_kernel_packed(x_ref, w_ref, pb_ref, g_ref, bt_ref, red_ref,
                               o_ref, *, eps):
    """Lane-packed path: one grid step == (one batch tile, one timeframe).

    Every ref is lane-dense and the body contains NO reshapes/relayouts.
      x_ref:   (tile_b, 1, P*K)   flattened patches of this batch tile / tf
      w_ref:   (P*K, P*D)         block-diagonal per-tf projection weight
      pb_ref:  (1, P*D)           fused Linear bias + positional embedding
      g_ref:   (1, P*D)           gamma tiled over patches, * 1/sqrt(D)
      bt_ref:  (1, P*D)           beta  tiled over patches, * 1/sqrt(D)
      red_ref: (P*D, P*D)         per-patch segment-mean matrix (1/D blocks)
      o_ref:   (tile_b, 1, P*D)
    """
    xv = x_ref[...][:, 0, :]                                       # (tile_b, P*K)
    y = jnp.dot(xv, w_ref[...], preferred_element_type=jnp.float32)
    y = y + pb_ref[...]
    # Per-patch LayerNorm statistics via MXU segment reduction (no lane
    # shuffles); two-pass variance avoids catastrophic cancellation.
    mean = jnp.dot(y, red_ref[...], preferred_element_type=jnp.float32)
    c = y - mean
    var = jnp.dot(c * c, red_ref[...], preferred_element_type=jnp.float32)
    out = c * jax.lax.rsqrt(var + eps) * g_ref[...] + bt_ref[...]  # EUP rsqrt
    o_ref[...] = out[:, None, :].astype(o_ref.dtype)


def _patch_embed_kernel_aligned(x_ref, w_ref, pb_ref, g_ref, bt_ref, o_ref, *,
                                eps):
    """128-aligned path: tall MXU matmul with a free leading-dim collapse.

      x_ref:  (tile_b, P, K)   w_ref: (K, D)   pb_ref: (P, D)
      g_ref:  (1, D)           bt_ref: (1, D)  o_ref:  (tile_b, P, D)
    """
    tb, n_p, k = x_ref.shape
    d = w_ref.shape[-1]
    # Leading-dim collapse only — layout-preserving when K % 128 == 0
    # (and n_patches % 8 == 0); this path is selected under that condition.
    x2d = x_ref[...].reshape(tb * n_p, k)
    y = jnp.dot(x2d, w_ref[...], preferred_element_type=jnp.float32)
    y = y.reshape(tb, n_p, d) + pb_ref[...][None]
    mean = jnp.mean(y, axis=-1, keepdims=True)
    c = y - mean
    var = jnp.mean(c * c, axis=-1, keepdims=True)     # two-pass variance
    o_ref[...] = (c * jax.lax.rsqrt(var + eps) * g_ref[...][None]
                  + bt_ref[...][None]).astype(o_ref.dtype)


# ---------------------------------------------------------------------------
# Parameter init (mirrors the module's __init__ shapes)
# ---------------------------------------------------------------------------
def init_params(key, n_features, patch_len, d_model, n_timeframes):
    patch_dim = n_features * patch_len
    k_w, k_b, k_pos = jax.random.split(key, 3)
    bound = 1.0 / math.sqrt(patch_dim)            # nn.Linear default init range
    return {
        'W': jax.random.uniform(k_w, (n_timeframes, patch_dim, d_model),
                                jnp.float32, minval=-bound, maxval=bound),
        'b': jax.random.uniform(k_b, (n_timeframes, d_model),
                                jnp.float32, minval=-bound, maxval=bound),
        'pos_embedding': jax.random.normal(
            k_pos, (1, 1000, d_model), jnp.float32) * 0.02,
        'gamma': jnp.ones((d_model,), jnp.float32),   # LayerNorm weight
        'beta': jnp.zeros((d_model,), jnp.float32),   # LayerNorm bias
    }


# ---------------------------------------------------------------------------
# Generation-aware tiling / VMEM budgeting
# ---------------------------------------------------------------------------
def _vmem_capacity_bytes():
    """Physical per-core VMEM; conservative (v7x-sized) fallback."""
    try:
        info_fn = getattr(pltpu, "get_tpu_info", None)
        if info_fn is not None:
            cap = int(getattr(info_fn(), "vmem_capacity_bytes", 0) or 0)
            if cap > 0:
                return cap
    except Exception:
        pass
    return 64 << 20


def _choose_tile_b(batch, row_io_bytes, row_scratch_bytes, const_bytes,
                   vmem_capacity):
    """Largest batch tile whose full working set fits a safe slice of VMEM.

    Per grid step:
      2 * tile_b * row_io_bytes   (x + out tiles, double-buffered)
      tile_b * row_scratch_bytes  (f32 y / centered / stats intermediates)
      const_bytes                 (W, pos+bias, gamma/beta, reduce matrix, x2)
    Taking the largest admissible tile also keeps per-step DMA comfortably
    above the ~2-8 MiB efficiency floor (0.35 us/step grid overhead, DMA ramp)
    whenever the batch allows it.
    """
    # TODO(synk): if a single batch row exceeds the budget (extreme n_patches),
    #             add a grid axis tiling n_patches in multiples of 8.
    budget = (vmem_capacity * 5) // 8 - const_bytes   # headroom for compiler scratch
    per_row = 2 * row_io_bytes + row_scratch_bytes
    tile_b = max(1, min(batch, budget // max(per_row, 1)))
    while batch % tile_b:                             # exact tiling, no ragged block
        tile_b -= 1
    return tile_b


# ---------------------------------------------------------------------------
# Forward wrapper
# ---------------------------------------------------------------------------
def patch_embedding_forward(x, params, patch_len, d_model, *,
                            use_bf16_inputs=False, eps=_LN_EPS):
    """x: [batch, n_tf, seq_len, n_features] (native PyTorch layout).

    Returns (patches [batch, n_tf, n_patches, d_model] float32,
             attention_mask [batch, n_tf, n_patches] bool).
    """
    batch, n_tf, seq_len, n_features = x.shape
    n_patches = max(1, math.ceil(seq_len / patch_len))
    required_len = n_patches * patch_len
    if seq_len < required_len:
        # NaN padding mirrors the PyTorch module exactly (mask stays all-True).
        x = jnp.pad(x, ((0, 0), (0, 0), (0, required_len - seq_len), (0, 0)),
                    constant_values=jnp.nan)
    elif seq_len > required_len:
        x = x[:, :, :required_len, :]

    pos_table = params['pos_embedding']
    if n_patches > pos_table.shape[1]:
        raise ValueError(f"n_patches={n_patches} exceeds positional table "
                         f"size {pos_table.shape[1]}")

    P, K, D = n_patches, patch_len * n_features, d_model
    inv_sqrt_d = 1.0 / math.sqrt(d_model)
    w = params['W']                                         # (n_tf, K, D)
    pos_bias = (pos_table[0, :P, :][None, :, :]
                + params['b'][:, None, :])                  # (n_tf, P, D)
    gamma_s = params['gamma'].reshape(1, D) * inv_sqrt_d    # fold 1/sqrt(D)
    beta_s = params['beta'].reshape(1, D) * inv_sqrt_d

    in_dtype = jnp.bfloat16 if use_bf16_inputs else jnp.float32
    itemsize_in = jnp.dtype(in_dtype).itemsize

    # Lane-packed path when K or D is not 128-aligned (and the block-diagonal
    # expansion stays small): x/out rows become single lane-dense runs and the
    # kernel needs no relayout reshape at all.
    lane_aligned = (K % 128 == 0) and (D % 128 == 0)
    packed_ok = ((P * K) * (P * D) * 4 <= (4 << 20)) and (P * D) <= 2048
    use_packed = (not lane_aligned) and packed_ok
    # TODO(synk): shapes that are neither lane-aligned nor small enough to
    #             lane-pack (huge n_patches with tiny d_model) fall back to
    #             the aligned path and pay masked partial stores.

    vmem_cap = _vmem_capacity_bytes()
    vmem_limit = int(min(96 << 20, (vmem_cap * 3) // 4))   # <=48 MiB on v7x
    flops = 2 * batch * n_tf * P * K * D
    out_bytes = batch * n_tf * P * D * 4

    if use_packed:
        xk = x.reshape(batch, n_tf, 1, P * K).astype(in_dtype)
        # Block-diagonal per-tf weight: W_packed[t, p*K+k, q*D+d] = (p==q)*W[t,k,d]
        # Built with an elementwise mask multiply (exact, no matmul rounding).
        mask = jnp.eye(P, dtype=jnp.float32)
        w_packed = (mask[None, :, None, :, None] * w[:, None, :, None, :]
                    ).reshape(n_tf, P * K, P * D).astype(in_dtype)
        pb = pos_bias.reshape(n_tf, 1, P * D)
        g = jnp.tile(gamma_s, (1, P))                       # (1, P*D)
        bt = jnp.tile(beta_s, (1, P))
        seg = jnp.arange(P * D, dtype=jnp.int32) // D
        red = (seg[:, None] == seg[None, :]).astype(jnp.float32) / float(D)

        row_io = P * K * itemsize_in + P * D * 4
        row_scratch = 4 * P * D * 4
        const_bytes = 2 * (w_packed.size * itemsize_in
                           + (pb.size + g.size + bt.size + red.size) * 4)
        tile_b = _choose_tile_b(batch, row_io, row_scratch, const_bytes, vmem_cap)
        grid = (batch // tile_b, n_tf)

        kernel = functools.partial(_patch_embed_kernel_packed, eps=eps)
        out = pl.pallas_call(
            kernel,
            out_shape=jax.ShapeDtypeStruct((batch, n_tf, 1, P * D), jnp.float32),
            grid=grid,
            in_specs=[
                pl.BlockSpec((tile_b, None, 1, P * K), lambda b, t: (b, t, 0, 0)),
                pl.BlockSpec((None, P * K, P * D), lambda b, t: (t, 0, 0)),
                pl.BlockSpec((None, 1, P * D), lambda b, t: (t, 0, 0)),
                pl.BlockSpec((1, P * D), lambda b, t: (0, 0)),
                pl.BlockSpec((1, P * D), lambda b, t: (0, 0)),
                pl.BlockSpec((P * D, P * D), lambda b, t: (0, 0)),
            ],
            out_specs=pl.BlockSpec((tile_b, None, 1, P * D),
                                   lambda b, t: (b, t, 0, 0)),
            compiler_params=pltpu.CompilerParams(
                dimension_semantics=("parallel", "parallel"),
                vmem_limit_bytes=vmem_limit),
            cost_estimate=pl.CostEstimate(
                flops=flops,
                transcendentals=batch * n_tf * P,
                bytes_accessed=int(xk.size * itemsize_in
                                   + w_packed.size * itemsize_in
                                   + (pb.size + g.size + bt.size + red.size) * 4
                                   + out_bytes)),
        )(xk, w_packed, pb, g, bt, red)
        patches = out.reshape(batch, n_tf, P, D)            # free view
    else:
        xk = x.reshape(batch, n_tf, P, K).astype(in_dtype)
        w_c = w.astype(in_dtype)

        row_io = P * K * itemsize_in + P * D * 4
        row_scratch = 4 * P * D * 4
        const_bytes = 2 * (K * D * itemsize_in + P * D * 4 + 2 * D * 4)
        tile_b = _choose_tile_b(batch, row_io, row_scratch, const_bytes, vmem_cap)
        grid = (batch // tile_b, n_tf)

        kernel = functools.partial(_patch_embed_kernel_aligned, eps=eps)
        patches = pl.pallas_call(
            kernel,
            out_shape=jax.ShapeDtypeStruct((batch, n_tf, P, D), jnp.float32),
            grid=grid,
            in_specs=[
                pl.BlockSpec((tile_b, None, P, K), lambda b, t: (b, t, 0, 0)),
                pl.BlockSpec((None, K, D), lambda b, t: (t, 0, 0)),
                pl.BlockSpec((None, P, D), lambda b, t: (t, 0, 0)),
                pl.BlockSpec((1, D), lambda b, t: (0, 0)),
                pl.BlockSpec((1, D), lambda b, t: (0, 0)),
            ],
            out_specs=pl.BlockSpec((tile_b, None, P, D),
                                   lambda b, t: (b, t, 0, 0)),
            compiler_params=pltpu.CompilerParams(
                dimension_semantics=("parallel", "parallel"),
                vmem_limit_bytes=vmem_limit),
            cost_estimate=pl.CostEstimate(
                flops=flops,
                transcendentals=batch * n_tf * P,
                bytes_accessed=int(xk.size * itemsize_in
                                   + w_c.size * itemsize_in
                                   + pos_bias.size * 4 + 2 * D * 4 + out_bytes)),
        )(xk, w_c, pos_bias, gamma_s, beta_s)

    attention_mask = jnp.ones((batch, n_tf, n_patches), dtype=jnp.bool_)
    return patches, attention_mask


# ---------------------------------------------------------------------------
# Plain-JAX reference (eval-mode dropout), accurate-precision matmul
# ---------------------------------------------------------------------------
def _reference_forward(x, params, patch_len, d_model):
    batch, n_tf, seq_len, n_features = x.shape
    n_patches = max(1, math.ceil(seq_len / patch_len))
    required_len = n_patches * patch_len
    if seq_len < required_len:
        x = jnp.pad(x, ((0, 0), (0, 0), (0, required_len - seq_len), (0, 0)),
                    constant_values=jnp.nan)
    elif seq_len > required_len:
        x = x[:, :, :required_len, :]
    xk = x.reshape(batch, n_tf, n_patches, patch_len * n_features)
    y = jnp.einsum('btpk,tkd->btpd', xk, params['W'],
                   precision=jax.lax.Precision.HIGHEST)
    y = y + params['b'][None, :, None, :]
    y = y + params['pos_embedding'][0, :n_patches][None, None]
    mean = y.mean(-1, keepdims=True)
    var = ((y - mean) ** 2).mean(-1, keepdims=True)
    y = (y - mean) / jnp.sqrt(var + _LN_EPS)
    y = y * params['gamma'] + params['beta']
    return y / math.sqrt(d_model)


if __name__ == "__main__":
    key = jax.random.PRNGKey(0)
    k1, k2, k3, k4 = jax.random.split(key, 4)

    # --- Config 1: d_model=32, patch_dim=16 (< 128) -> lane-packed path. ---
    batch, n_tf, seq_len, n_features = 2, 2, 16, 4
    patch_len, d_model = 4, 32
    params = init_params(k1, n_features, patch_len, d_model, n_tf)
    x = jax.random.normal(k2, (batch, n_tf, seq_len, n_features), jnp.float32)

    patches, attn_mask = patch_embedding_forward(x, params, patch_len, d_model)
    patches = jax.block_until_ready(patches)
    attn_mask = jax.block_until_ready(attn_mask)
    ref = _reference_forward(x, params, patch_len, d_model)
    n_p = seq_len // patch_len
    assert patches.shape == (batch, n_tf, n_p, d_model)
    assert attn_mask.shape == (batch, n_tf, n_p)
    assert attn_mask.dtype == jnp.bool_ and bool(jnp.all(attn_mask))
    # Tolerance covers MXU f32-precision differences vs the HIGHEST-precision
    # reference; real bugs would be O(0.1-1).
    assert jnp.allclose(patches, ref, atol=5e-3, rtol=5e-3), \
        float(jnp.max(jnp.abs(patches - ref)))

    # bf16-input bandwidth path (f32 accumulate / epilogue), looser tolerance.
    patches_bf16, _ = patch_embedding_forward(x, params, patch_len, d_model,
                                              use_bf16_inputs=True)
    patches_bf16 = jax.block_until_ready(patches_bf16)
    assert jnp.allclose(patches_bf16, ref, atol=6e-2, rtol=6e-2), \
        float(jnp.max(jnp.abs(patches_bf16 - ref)))

    # --- Config 2: patch_dim=128, d_model=128 -> aligned tall-matmul path. ---
    batch2, n_tf2, seq_len2, n_features2 = 2, 1, 64, 16
    patch_len2, d_model2 = 8, 128
    params2 = init_params(k3, n_features2, patch_len2, d_model2, n_tf2)
    x2 = jax.random.normal(k4, (batch2, n_tf2, seq_len2, n_features2),
                           jnp.float32)
    patches2, mask2 = patch_embedding_forward(x2, params2, patch_len2, d_model2)
    patches2 = jax.block_until_ready(patches2)
    ref2 = _reference_forward(x2, params2, patch_len2, d_model2)
    assert patches2.shape == (batch2, n_tf2, seq_len2 // patch_len2, d_model2)
    assert bool(jnp.all(mask2))
    assert jnp.allclose(patches2, ref2, atol=5e-3, rtol=5e-3), \
        float(jnp.max(jnp.abs(patches2 - ref2)))

    print("KERNEL_OK")
</pallas_src>

<mosaic_0001>
module attributes {stable_mosaic.version = 11 : i64} {
  func.func @_patch_embed_kernel_packed(%arg0: i32, %arg1: i32, %arg2: memref<2x1x1x64xf32, #tpu.memory_space<vmem>>, %arg3: memref<1x64x128xf32, #tpu.memory_space<vmem>>, %arg4: memref<1x1x128xf32, #tpu.memory_space<vmem>>, %arg5: memref<1x128xf32, #tpu.memory_space<vmem>>, %arg6: memref<1x128xf32, #tpu.memory_space<vmem>>, %arg7: memref<128x128xf32, #tpu.memory_space<vmem>>, %arg8: memref<2x1x1x128xf32, #tpu.memory_space<vmem>>) attributes {dimension_semantics = [#tpu.dimension_semantics<parallel>, #tpu.dimension_semantics<parallel>], iteration_bounds = array<i64: 1, 2>, scalar_prefetch = 0 : i64, scratch_operands = 0 : i64, tpu.core_type = #tpu.core_type<tc>, window_params = [{transform_indices = @transform_0, window_bounds = array<i64: 2, 1, 1, 64>}, {transform_indices = @transform_1, window_bounds = array<i64: 1, 64, 128>}, {transform_indices = @transform_2, window_bounds = array<i64: 1, 1, 128>}, {pipeline_mode = #tpu.pipeline_mode<synchronous>, transform_indices = @transform_3, window_bounds = array<i64: 1, 128>}, {pipeline_mode = #tpu.pipeline_mode<synchronous>, transform_indices = @transform_4, window_bounds = array<i64: 1, 128>}, {pipeline_mode = #tpu.pipeline_mode<synchronous>, transform_indices = @transform_5, window_bounds = array<i64: 128, 128>}, {transform_indices = @transform_6, window_bounds = array<i64: 2, 1, 1, 128>}]} {
    %c0 = arith.constant 0 : index
    %c0_0 = arith.constant 0 : index
    %c0_1 = arith.constant 0 : index
    %c0_2 = arith.constant 0 : index
    %0 = vector.load %arg2[%c0, %c0_0, %c0_1, %c0_2] : memref<2x1x1x64xf32, #tpu.memory_space<vmem>>, vector<2x1x1x64xf32>
    %1 = vector.shape_cast %0 : vector<2x1x1x64xf32> to vector<2x1x64xf32>
    %2 = vector.shape_cast %1 : vector<2x1x64xf32> to vector<2x64xf32>
    %c0_3 = arith.constant 0 : index
    %c0_4 = arith.constant 0 : index
    %c0_5 = arith.constant 0 : index
    %3 = vector.load %arg3[%c0_3, %c0_4, %c0_5] : memref<1x64x128xf32, #tpu.memory_space<vmem>>, vector<1x64x128xf32>
    %4 = vector.shape_cast %3 : vector<1x64x128xf32> to vector<64x128xf32>
    %cst = arith.constant dense<0.000000e+00> : vector<2x128xf32>
    %5 = tpu.matmul %2, %4, %cst {dimension_numbers = #tpu.dot_dimension_numbers<[1], [0], [0], [1], [0, 0, 1, 1], [], []>} : vector<2x64xf32>, vector<64x128xf32>, vector<2x128xf32> -> vector<2x128xf32>
    %c0_6 = arith.constant 0 : index
    %c0_7 = arith.constant 0 : index
    %c0_8 = arith.constant 0 : index
    %6 = vector.load %arg4[%c0_6, %c0_7, %c0_8] : memref<1x1x128xf32, #tpu.memory_space<vmem>>, vector<1x1x128xf32>
    %7 = vector.shape_cast %6 : vector<1x1x128xf32> to vector<1x128xf32>
    %8 = vector.broadcast %7 : vector<1x128xf32> to vector<2x128xf32>
    %9 = arith.addf %5, %8 : vector<2x128xf32>
    %c0_9 = arith.constant 0 : index
    %c0_10 = arith.constant 0 : index
    %10 = vector.load %arg7[%c0_9, %c0_10] : memref<128x128xf32, #tpu.memory_space<vmem>>, vector<128x128xf32>
    %cst_11 = arith.constant dense<0.000000e+00> : vector<2x128xf32>
    %11 = tpu.matmul %9, %10, %cst_11 {dimension_numbers = #tpu.dot_dimension_numbers<[1], [0], [0], [1], [0, 0, 1, 1], [], []>} : vector<2x128xf32>, vector<128x128xf32>, vector<2x128xf32> -> vector<2x128xf32>
    %12 = arith.subf %9, %11 : vector<2x128xf32>
    %13 = arith.mulf %12, %12 : vector<2x128xf32>
    %c0_12 = arith.constant 0 : index
    %c0_13 = arith.constant 0 : index
    %14 = vector.load %arg7[%c0_12, %c0_13] : memref<128x128xf32, #tpu.memory_space<vmem>>, vector<128x128xf32>
    %cst_14 = arith.constant dense<0.000000e+00> : vector<2x128xf32>
    %15 = tpu.matmul %13, %14, %cst_14 {dimension_numbers = #tpu.dot_dimension_numbers<[1], [0], [0], [1], [0, 0, 1, 1], [], []>} : vector<2x128xf32>, vector<128x128xf32>, vector<2x128xf32> -> vector<2x128xf32>
    %cst_15 = arith.constant 9.99999974E-6 : f32
    %16 = vector.broadcast %cst_15 : f32 to vector<2x128xf32>
    %17 = arith.addf %15, %16 : vector<2x128xf32>
    %18 = math.rsqrt %17 : vector<2x128xf32>
    %19 = arith.mulf %12, %18 : vector<2x128xf32>
    %c0_16 = arith.constant 0 : index
    %c0_17 = arith.constant 0 : index
    %20 = vector.load %arg5[%c0_16, %c0_17] : memref<1x128xf32, #tpu.memory_space<vmem>>, vector<1x128xf32>
    %21 = vector.broadcast %20 : vector<1x128xf32> to vector<2x128xf32>
    %22 = arith.mulf %19, %21 : vector<2x128xf32>
    %c0_18 = arith.constant 0 : index
    %c0_19 = arith.constant 0 : index
    %23 = vector.load %arg6[%c0_18, %c0_19] : memref<1x128xf32, #tpu.memory_space<vmem>>, vector<1x128xf32>
    %24 = vector.broadcast %23 : vector<1x128xf32> to vector<2x128xf32>
    %25 = arith.addf %22, %24 : vector<2x128xf32>
    %26 = vector.shape_cast %25 : vector<2x128xf32> to vector<2x1x128xf32>
    %c0_20 = arith.constant 0 : index
    %c0_21 = arith.constant 0 : index
    %c0_22 = arith.constant 0 : index
    %c0_23 = arith.constant 0 : index
    %27 = vector.load %arg8[%c0_20, %c0_21, %c0_22, %c0_23] : memref<2x1x1x128xf32, #tpu.memory_space<vmem>>, vector<2x1x1x128xf32>
    %28 = vector.shape_cast %27 : vector<2x1x1x128xf32> to vector<2x1x128xf32>
    %29 = vector.shape_cast %26 : vector<2x1x128xf32> to vector<2x1x1x128xf32>
    tpu.vector_store %arg8[%c0_20, %c0_21, %c0_22, %c0_23], %29 {strides = array<i32>} : memref<2x1x1x128xf32, #tpu.memory_space<vmem>>, vector<2x1x1x128xf32>,
    return
  }
  func.func @transform_0(%arg0: i32, %arg1: i32) -> (i32, i32, i32, i32) {
    %c0_i32 = arith.constant 0 : i32
    %c0_i32_0 = arith.constant 0 : i32
    %c0_i32_1 = arith.constant 0 : i32
    return %arg0, %arg1, %c0_i32, %c0_i32_0 : i32, i32, i32, i32
  }
  func.func @transform_1(%arg0: i32, %arg1: i32) -> (i32, i32, i32) {
    %c0_i32 = arith.constant 0 : i32
    %c0_i32_0 = arith.constant 0 : i32
    %c0_i32_1 = arith.constant 0 : i32
    return %arg1, %c0_i32, %c0_i32_0 : i32, i32, i32
  }
  func.func @transform_2(%arg0: i32, %arg1: i32) -> (i32, i32, i32) {
    %c0_i32 = arith.constant 0 : i32
    %c0_i32_0 = arith.constant 0 : i32
    %c0_i32_1 = arith.constant 0 : i32
    return %arg1, %c0_i32, %c0_i32_0 : i32, i32, i32
  }
  func.func @transform_3(%arg0: i32, %arg1: i32) -> (i32, i32) {
    %c0_i32 = arith.constant 0 : i32
    %c0_i32_0 = arith.constant 0 : i32
    %c0_i32_1 = arith.constant 0 : i32
    return %c0_i32, %c0_i32_0 : i32, i32
  }
  func.func @transform_4(%arg0: i32, %arg1: i32) -> (i32, i32) {
    %c0_i32 = arith.constant 0 : i32
    %c0_i32_0 = arith.constant 0 : i32
    %c0_i32_1 = arith.constant 0 : i32
    return %c0_i32, %c0_i32_0 : i32, i32
  }
  func.func @transform_5(%arg0: i32, %arg1: i32) -> (i32, i32) {
    %c0_i32 = arith.constant 0 : i32
    %c0_i32_0 = arith.constant 0 : i32
    %c0_i32_1 = arith.constant 0 : i32
    return %c0_i32, %c0_i32_0 : i32, i32
  }
  func.func @transform_6(%arg0: i32, %arg1: i32) -> (i32, i32, i32, i32) {
    %c0_i32 = arith.constant 0 : i32
    %c0_i32_0 = arith.constant 0 : i32
    %c0_i32_1 = arith.constant 0 : i32
    return %arg0, %arg1, %c0_i32, %c0_i32_0 : i32, i32, i32, i32
  }
}

</mosaic_0001>

<bundles_post_ra>
// kernel: tpu_custom_call.1
= control target key start
LH: loop header
LB: loop body
LE: loop exit
PB: predicated region body
PF: predicated region fallthrough
CT: control target
= control target key end

     0   :  { %s1690_s0 = inlined_call_operand.hbm [shape: f32[2,2,1,64], index: 0, kind: input, shape index: {}]   ;;  %s1691_s1 = inlined_call_operand.hbm [shape: f32[2,64,128], index: 1, kind: input, shape index: {}]   ;;  %s1692_s2 = inlined_call_operand.vmem [shape: f32[2,1,128], index: 2, kind: input, shape index: {}]   ;;  %s1693_s3 = inlined_call_operand.vmem [shape: f32[1,128], index: 3, kind: input, shape index: {}]   ;;  %s1694_s4 = inlined_call_operand.vmem [shape: f32[1,128], index: 4, kind: input, shape index: {}]   ;;  %s1695_s5 = inlined_call_operand.hbm [shape: f32[128,128], index: 5, kind: input, shape index: {}]   ;;  %s1696_s6 = inlined_call_operand.hbm [shape: f32[2,2,1,128], index: 6, kind: output, shape index: {}]  }
   0x1   :  { %1708 = sst [smem:[#allocation18_spill]] %s1690_s0 }
   0x2   :  { %1709 = sst [smem:[#allocation19_spill]] %s1695_s5 }
   0x3   :  { %11 = vsyncpa [#allocation3], 0 }
   0x4   :  { %13 = vsyncpa [#allocation3 + $0x1], 0 }
   0x5   :  { %14 = vsyncpa [#allocation6], 0 }
   0x6   :  { %16 = vsyncpa [#allocation6 + $0x1], 0 }
   0x7   :  { %17 = vsyncpa [#allocation4], 0 }
   0x8   :  { %19 = vsyncpa [#allocation4 + $0x1], 0  ;;  %s1351_s21 = smov 0   ;;  %s1353_s22 = smov 0  }
   0x9   :  { %s1355_s23 = smov 0   ;;  %s1357_s24 = smov 0  }
   0xa   :  { %s1359_s25 = smov 0   ;;  %s1361_s26 = smov 0  }
   0xb LB: > { %1710 = sst [smem:[#allocation13_spill]] %s1278_s21  ;;  %s1382_s27 = sadd.s32 4294967295, %s1298_s26   ;;  %s1298_s26 = sphi %s1361_s26, %s25_s26   ;;  %s1294_s25 = sphi %s1359_s25, %s1745_s25   ;;  %s1290_s24 = sphi %s1357_s24, %s1744_s24   ;;  %s1286_s23 = sphi %s1355_s23, %s1740_s23   ;;  %s1282_s22 = sphi %s1353_s22, %s1743_s22   ;;  %s1278_s21 = sphi %s1351_s21, %s1742_s21  }
   0xc   : > { %1711 = sst [smem:[#allocation14_spill]] %s1286_s23  ;;  %s811_s28 = sadd.s32 4294967294, %s1298_s26  }
   0xd   : > { %p53_p0 = scmp.ne.s32.totalorder %s1286_s23, %s1282_s22  ;;  %p54_p1 = scmp.eq.s32.totalorder %s1298_s26, 0 }
   0xe   : > { %p59_p2 = scmp.ne.s32.totalorder %s1282_s22, %s1278_s21  ;;  %p1697_p3 = scmp.eq.s32.totalorder %s1382_s27, 0 }
   0xf   : > { %p200_p4 = scmp.eq.s32.totalorder %s1382_s27, 1  ;;  %p1393_p5 = por %p54_p1, %p53_p0 }
  0x10   : > { %p206_p6 = scmp.eq.s32.totalorder %s811_s28, 1  ;;  %p1399_p7 = por %p1697_p3, %p59_p2 }
  0x11   : > { %p1403_p8 = por %p200_p4, %p53_p0  ;;  %p812_p10 = scmp.ge.s32.totalorder %s1298_s26, 1 }
  0x12   : > { %s1713_s7 = scalar_select %p1399_p7, 1, 0 }
  0x13   : > { %s1714_s8 = scalar_select %p1403_p8, 1, 0 }
  0x14   : > { %p1407_p9 = por %p206_p6, %p59_p2  ;;  %p213_p11 = scmp.lt.s32.totalorder %s1298_s26, 3 }
  0x15   : > { %s1300_s11 = smov [#allocation7]   ;;  %p1054_p1 = scmp.lt.s32.totalorder %s1298_s26, 2 }
  0x16   : > { %s1715_s9 = scalar_select %p1407_p9, 1, 0 }
  0x17   : > { %p1413_p12 = pnand %p812_p10, %p213_p11  ;;  %s231_s12 = sshll.u32 %s1300_s11, 4  ;;  %s1417_s12 = int_to_ptr.vmem [resolvable:$true] %s231_s12 }
  0x18   : > { %1716 = sst [smem:[#allocation15_spill]] %s1715_s9  ;;  %p1431_p4 = pnand %p1054_p1, %p1393_p5 }
  0x19   : > { %s1717_s10 = scalar_select %p1413_p12, 1, 0 }
  0x1a   : > { %p1038_p13 = pneg %p1413_p12  ;;  %s34_s15 = sadd.s32 1, %s1294_s25 }
  0x1b   : > { %s1719_s14 = scalar_select %p1431_p4, 1, 0 }
  0x1c   : > { %p1425_p2 = pnand %p1038_p13, %p1697_p3  ;;  %p1436_p6 = scmp.ge.s32.totalorder %s34_s15, 2 }
  0x1d   : > { %s1721_s5 = sld [smem:[#allocation19_spill]] }
  0x1e   : > { %s1720_s16 = scalar_select %p1436_p6, 1, 0 }
  0x1f   : > { %p1122_p11 = pneg %p1425_p2 }
  0x23   : > { %s1120_s19 = scalar_lea.hbm %s1721_s5, 2048 }
  0x24   : > { %p1121_p10 = scmp.ne.s32.totalorder %s1721_s5, %s1120_s19  ;;  %p1127_p1 = scmp.lt.u32.totalorder %s1120_s19, %s1721_s5 }
  0x26   : > { %p1123_p13 = pnand %p1122_p11, %p1121_p10 }
  0x28   : > { %p1124_p5 = pneg %p1123_p13 }
  0x2a   : > { %p1129_p0 = pnand %p1127_p1, %p1124_p5 }
  0x2c   : > { %1132 = shalt.err (!%p1129_p0)
}
  0x2d   : > { %s1133_s29 = scalar_lea.vmem %s1417_s12, 2048  ;;  %p1141_p7 = scmp.lt.s32.totalorder %s1417_s12, %s1417_s12 }
  0x2e   : > { %p1134_p3 = scmp.ne.s32.totalorder %s1417_s12, %s1133_s29  ;;  %p1142_p12 = scmp.lt.s32.totalorder %s1133_s29, %s1133_s29 }
  0x30   : > { %p1136_p9 = pnand %p1134_p3, %p1122_p11  ;;  %p1143_p4 = por %p1142_p12, %p1141_p7 }
  0x32   : > { %p1137_p8 = pneg %p1136_p9 }
  0x34   : > { %p1144_p6 = pnand %p1143_p4, %p1137_p8 }
  0x36   : > { %1147 = shalt.err (!%p1144_p6)
}
  0x37   : > { %s1704_s17 = smov 128   ;;  %s1705_s18 = smov 8  }
  0x38   : > { %1041 = dma.hbm_to_vmem [thread:$0]  (!%p1425_p2), %s1721_s5, 2048, %s1417_s12, [#allocation6], %s1704_s17, %s1704_s17, %s1705_s18  }
  0x39   : > { %s1465_s29 = sand.u32 1, %s1286_s23   ;;  %p1722_p3 = scmp.ne.s32.totalorder %s1720_s16, 0 }
  0x3a   : > { %s815_s28 = sshll.u32 %s1465_s29, 1  ;;  %s816_s13 = sshll.u32 %s1294_s25, 4 }
  0x3b   : > { %s1747_s15 = smov (%p1722_p3, %s34_s15), 0  ;;  %s1724_s0 = sld [smem:[#allocation18_spill]] }
  0x3c   : > { %1723 = sst [smem:[#allocation16_spill]] %s1747_s15  ;;  %s42_s30 = ssub.s32 %s1294_s25, %s1747_s15 }
  0x3d   : > { %p44_p7 = scmp.eq.s32.totalorder %s42_s30, 0  ;;  %s249_s12 = scalar_lea.vmem [#allocation2], %s815_s28 }
  0x3e   : > { %s258_s16 = sshll.u32 %s249_s12, 4  ;;  %s1725_s19 = sadd.s32 1, %s1286_s23  ;;  %s1485_s16 = int_to_ptr.vmem [resolvable:$true] %s258_s16 }
  0x3f   : > { %s1483_s20 = scalar_select %p44_p7, %s1286_s23, %s1725_s19  }
  0x40   : > { %s246_s17 = scalar_lea.sflag [#allocation3], %s1465_s29  ;;  %p1727_p9 = scmp.ne.s32.totalorder %s1719_s14, 0 }
  0x41   : > { %s1478_s21 = scalar_lea.hbm %s1724_s0, %s816_s13  ;;  %1726 = sst [smem:[#allocation17_spill]] %s1483_s20 }
  0x42   : > { %s1148_s18 = scalar_lea.hbm %s1478_s21, 32  ;;  %p1150_p12 = pneg %p1727_p9 }
  0x43   : > { %p1149_p8 = scmp.ne.s32.totalorder %s1478_s21, %s1148_s18  ;;  %s1153_s13 = scalar_lea.hbm %s1724_s0, 64 }
  0x44   : > { %p1154_p4 = scmp.lt.u32.totalorder %s1478_s21, %s1724_s0  ;;  %p1155_p6 = scmp.lt.u32.totalorder %s1153_s13, %s1148_s18 }
  0x45   : > { %p1151_p0 = pnand %p1150_p12, %p1149_p8  ;;  %p1157_p11 = scmp.lt.u32.totalorder %s1148_s18, %s1478_s21 }
  0x46   : > { %p1156_p10 = por %p1155_p6, %p1154_p4 }
  0x47   : > { %p1152_p2 = pneg %p1151_p0 }
  0x48   : > { %p1158_p13 = por %p1157_p11, %p1156_p10 }
  0x4a   : > { %p1159_p5 = pnand %p1158_p13, %p1152_p2 }
  0x4c   : > { %1162 = shalt.err (!%p1159_p5)
}
  0x4d   : > { %s1163_s12 = scalar_lea.vmem %s1485_s16, 32  ;;  %s1303_s19 = smov [#allocation2]  }
  0x4e   : > { %p1164_p1 = scmp.ne.s32.totalorder %s1485_s16, %s1163_s12  ;;  %s1168_s9 = sshll.u32 %s1303_s19, 4  ;;  %s1169_s9 = int_to_ptr.vmem [resolvable:$false] %s1168_s9 }
  0x4f   : > { %s1170_s30 = scalar_lea.vmem %s1169_s9, 64  ;;  %p1171_p8 = scmp.lt.s32.totalorder %s1485_s16, %s1169_s9 }
  0x50   : > { %p1166_p3 = pnand %p1164_p1, %p1150_p12  ;;  %p1172_p0 = scmp.lt.s32.totalorder %s1170_s30, %s1163_s12 }
  0x52   : > { %p1167_p7 = pneg %p1166_p3  ;;  %p1173_p4 = por %p1172_p0, %p1171_p8 }
  0x54   : > { %p1174_p6 = pnand %p1173_p4, %p1167_p7 }
  0x56   : > { %1177 = shalt.err (!%p1174_p6)
}
  0x57   : > { %s1304_s18 = smov 32   ;;  %s1305_s13 = smov 16  }
  0x58   : > { %s1306_s28 = smov 1   ;;  %s268_s11 = sand.u32 1, %s1298_s26  }
  0x59   : > { %1045 = dma.hbm_to_vmem [thread:$0]  (!%p1727_p9), %s1478_s21, 32, %s1485_s16, %s246_s17, %s1304_s18, %s1305_s13, %s1306_s28  }
  0x5a   : > { %s817_s19 = sshll.u32 %s1465_s29, 6  ;;  %s835_s12 = sshll.u32 %s1294_s25, 10 }
  0x5b   : > { %s272_s9 = scalar_lea.vmem [#allocation5], %s817_s19  ;;  %s1521_s15 = scalar_lea.hbm %s1691_s1, %s835_s12 }
  0x5c   : > { %s279_s30 = sshll.u32 %s272_s9, 4  ;;  %s1525_s20 = scalar_lea.sflag [#allocation6], %s268_s11  ;;  %s1523_s30 = int_to_ptr.vmem [resolvable:$true] %s279_s30 }
  0x5d   : > { %s1178_s23 = scalar_lea.hbm %s1521_s15, 1024  ;;  %s1183_s0 = scalar_lea.hbm %s1691_s1, 2048 }
  0x5e   : > { %p1179_p2 = scmp.ne.s32.totalorder %s1521_s15, %s1178_s23  ;;  %p1184_p13 = scmp.lt.u32.totalorder %s1521_s15, %s1691_s1 }
  0x5f   : > { %p1185_p5 = scmp.lt.u32.totalorder %s1183_s0, %s1178_s23  ;;  %p1187_p3 = scmp.lt.u32.totalorder %s1178_s23, %s1521_s15 }
  0x60   : > { %p1181_p10 = pnand %p1179_p2, %p1150_p12 }
  0x61   : > { %p1186_p1 = por %p1185_p5, %p1184_p13 }
  0x62   : > { %p1182_p11 = pneg %p1181_p10 }
  0x63   : > { %p1188_p7 = por %p1187_p3, %p1186_p1 }
  0x65   : > { %p1189_p8 = pnand %p1188_p7, %p1182_p11 }
  0x67   : > { %1192 = shalt.err (!%p1189_p8)
}
  0x68   : > { %s1193_s16 = scalar_lea.vmem %s1523_s30, 1024  ;;  %s1307_s18 = smov [#allocation5]  }
  0x69   : > { %p1194_p0 = scmp.ne.s32.totalorder %s1523_s30, %s1193_s16  ;;  %s1198_s13 = sshll.u32 %s1307_s18, 4  ;;  %s1199_s13 = int_to_ptr.vmem [resolvable:$false] %s1198_s13 }
  0x6a   : > { %s1200_s28 = scalar_lea.vmem %s1199_s13, 2048  ;;  %p1201_p2 = scmp.lt.s32.totalorder %s1523_s30, %s1199_s13 }
  0x6b   : > { %p1196_p4 = pnand %p1194_p0, %p1150_p12  ;;  %p1202_p10 = scmp.lt.s32.totalorder %s1200_s28, %s1193_s16 }
  0x6d   : > { %p1197_p6 = pneg %p1196_p4  ;;  %p1203_p13 = por %p1202_p10, %p1201_p2 }
  0x6f   : > { %p1204_p5 = pnand %p1203_p13, %p1197_p6 }
  0x71   : > { %1207 = shalt.err (!%p1204_p5)
}
  0x72   : > { %s1728_s23 = smov 8   ;;  %s1729_s11 = smov 128  }
  0x73   : > { %1048 = dma.hbm_to_vmem [thread:$0]  (!%p1727_p9), %s1521_s15, 1024, %s1523_s30, %s1525_s20, %s1729_s11, %s1729_s11, %s1728_s23  }
  0x74   : > { %p1730_p12 = scmp.ne.s32.totalorder %s1717_s10, 0 }
  0x75   : > { %s1557_s19 = sand.u32 (!%p1730_p12), 1, %s1282_s22   ;;  %p1731_p11 = scmp.ne.s32.totalorder (!%p1730_p12), %s1713_s7, 0 }
  0x76   : > { %297 = sbr.rel (%p1730_p12) target bundleno = 832 (0x340), region = 44  ;;  %s821_s12 = sshll.u32 (!%p1730_p12), %s1557_s19, 1 }
  0x77   : > { %s300_s9 = scalar_lea.sflag (!%p1730_p12), [#allocation3], %s1557_s19  ;;  %s1563_s14 = scalar_lea.vmem (!%p1730_p12), [#allocation2], %s821_s12 }
  0x7d   : > { %1261 = dma.done.wait (%p1731_p11), %s300_s9, 32  }
  0x7e   : > { %1263 = vsyncadd (%p1731_p11), %s300_s9, 4294967264  ;;  %s308_s10 = sand.u32 1, %s1382_s27   ;;  %s822_s15 = sshll.u32 %s1557_s19, 6 }
  0x7f   : > { %s309_s20 = scalar_lea.sflag [#allocation6], %s308_s10  ;;  %s1571_s30 = scalar_lea.vmem [#allocation5], %s822_s15 }
  0x80   : > { %1265 = dma.done.wait (%p1731_p11), %s309_s20, 1024  }
  0x81   : > { %1267 = vsyncadd (%p1731_p11), %s309_s20, 4294966272  ;;  %p1732_p9 = scmp.eq.s32.totalorder %s1382_s27, 0 }
  0x83   : > { %1269 = dma.done.wait (%p1732_p9), [#allocation6], 2048   ;;  %p1733_p1 = pmov %p1732_p9 }
  0x84   : > { %v1308_v0 = vmov 0.0|0.0   ;;  %vm1309_vm0 = vmmov 0   ;;  %v1310_v1 = vmov 0.0   ;;  %v1311_v2 = vmov 1966171168   ;;  %v360_v5 = vld [vmem:[%s1571_s30] sm:$0xff] }
  0x85   : > { %1271 = vsyncadd (%p1733_p1), [#allocation6], 4294965248  ;;  %968 = vmatprep.subr.bf16.mxu0 %v1308_v0  ;;  %895 = vmatprep.mubr.msk.f32.mxu0 %vm1309_vm0, %v1310_v1  ;;  %v379_v3 = vunpack.c.l.s4 %v1311_v2  ;;  %v381_v4 = vlaneseq  ;;  %v361_v6 = vld [vmem:[%s1571_s30 + $0x8] sm:$0xff]  ;;  %v362_v7 = vld [vmem:[%s1571_s30 + $0x10] sm:$0xff]  ;;  %vm392_vm1 = vcmask 523264   ;;  %p354_p3 = scmp.lt.s32.totalorder %s1290_s24, 1 }
  0x86   : > { %980 = vmatprep.subr.bf16.mxu1 %v1308_v0  ;;  %930 = vmatprep.mubr.msk.f32.mxu1 %vm1309_vm0, %v1310_v1  ;;  %v969_v8 = vpack.c.bf16 %v361_v6, %v360_v5  ;;  %v363_v9 = vld [vmem:[%s1571_s30 + $0x18] sm:$0xff]  ;;  %v364_v10 = vld [vmem:[%s1571_s30 + $0x20] sm:$0xff]  ;;  %v466_v17 = vld [vmem:[#allocation7 + $0x8] sm:$0xff]  ;;  %s832_s18 = sshll.u32 %s1290_s24, 4  ;;  %s352_s13 = scalar_lea.vmem [#allocation8], %s821_s12 }
  0x87   : > { %v358_v11 = vld [vmem:[%s1563_s14] sm:$0x1]  ;;  %v380_v12 = vunpack.c.0.s8 %v379_v3  ;;  %v382_v13 = vshrl.u32 %v381_v4, 7  ;;  %v972_v14 = vpack.c.bf16 %v363_v9, %v362_v7  ;;  %v359_v15 = vld [vmem:[%s1563_s14 + $0x1] sm:$0x1]  ;;  %v465_v16 = vld [vmem:[#allocation7] sm:$0xff]  ;;  %s1639_s9 = scalar_lea.hbm %s1696_s6, %s832_s18 }
  0x88   : > { %970 = vmatpush3.bf16.msra.mxu0 %v969_v8  ;;  %v365_v18 = vld [vmem:[%s1571_s30 + $0x28] sm:$0xff]  ;;  %v981_v19 = vpack.c.bf16 %v466_v17, %v465_v16  ;;  %v467_v20 = vld [vmem:[#allocation7 + $0x10] sm:$0xff]  ;;  %v468_v21 = vld [vmem:[#allocation7 + $0x18] sm:$0xff]  ;;  %v377_v22 = vcombine.low %v358_v11, %v359_v15  ;;  %s355_s27 = scalar_select %p354_p3, %s1290_s24, 1 }
  0x89   : > { %971 = vmatprep.subr.bf16.mxu0 %v1308_v0  ;;  %v1596_v23 = vsub.s32 %v380_v12, %v382_v13  ;;  %v984_v24 = vpack.c.bf16 %v468_v21, %v467_v20  ;;  %v975_v25 = vpack.c.bf16 %v365_v18, %v364_v10  ;;  %v469_v26 = vld [vmem:[#allocation7 + $0x20] sm:$0xff]  ;;  %v470_v27 = vld [vmem:[#allocation7 + $0x28] sm:$0xff]  ;;  %v366_v28 = vld [vmem:[%s1571_s30 + $0x30] sm:$0xff]  ;;  %s684_s28 = sshll.u32 %s352_s13, 4  ;;  %s669_s24 = scalar_lea.sflag [#allocation4], %s1557_s19  ;;  %s1641_s28 = int_to_ptr.vmem [resolvable:$true] %s684_s28 }
  0x8a   : > { %982 = vmatpush3.bf16.msra.mxu1 %v981_v19  ;;  %v367_v29 = vld [vmem:[%s1571_s30 + $0x38] sm:$0xff]  ;;  %v987_v31 = vpack.c.bf16 %v470_v27, %v469_v26  ;;  %v471_v33 = vld [vmem:[#allocation7 + $0x30] sm:$0xff]  ;;  %v473_v37 = vld [vmem:[#allocation7 + $0x40] sm:$0xff]  ;;  %s356_s17 = scalar_lea.vmem %s1692_s2, %s355_s27  ;;  %s1208_s14 = scalar_lea.vmem %s1641_s28, 32 }
  0x8b   : > { %983 = vmatprep.subr.bf16.mxu1 %v1308_v0  ;;  %v384_v30 = vrot.slane %v377_v22, %v1596_v23  ;;  %v978_v32 = vpack.c.bf16 %v367_v29, %v366_v28  ;;  %v472_v34 = vld [vmem:[#allocation7 + $0x38] sm:$0xff]  ;;  %v474_v38 = vld [vmem:[#allocation7 + $0x48] sm:$0xff]  ;;  %v475_v40 = vld [vmem:[#allocation7 + $0x50] sm:$0xff]  ;;  %p1209_p7 = scmp.ne.s32.totalorder %s1641_s28, %s1208_s14  ;;  %p1734_p8 = scmp.ne.s32.totalorder %s1714_s8, 0 }
  0x8c   : > { %973 = vmatpush3.bf16.msra.mxu0 %v972_v14  ;;  %v990_v36 = vpack.c.bf16 %v472_v34, %v471_v33  ;;  %v993_v39 = vpack.c.bf16 %v474_v38, %v473_v37  ;;  %v476_v41 = vld [vmem:[#allocation7 + $0x58] sm:$0xff]  ;;  %v477_v43 = vld [vmem:[#allocation7 + $0x60] sm:$0xff]  ;;  %v478_v44 = vld [vmem:[#allocation7 + $0x68] sm:$0xff]  ;;  %s1312_s12 = smov [#allocation8]  }
  0x8d   : > { %974 = vmatprep.subr.bf16.mxu0 %v1308_v0  ;;  %v391_v35 = vrot.slane %v384_v30, %v1596_v23  ;;  %v996_v42 = vpack.c.bf16 %v476_v41, %v475_v40  ;;  %v999_v45 = vpack.c.bf16 %v478_v44, %v477_v43  ;;  %v479_v46 = vld [vmem:[#allocation7 + $0x70] sm:$0xff]  ;;  %v480_v47 = vld [vmem:[#allocation7 + $0x78] sm:$0xff]  ;;  %p1210_p0 = pnand %p1209_p7, %p1734_p8  ;;  %s1212_s10 = sshll.u32 %s1312_s12, 4  ;;  %s1213_s10 = int_to_ptr.vmem [resolvable:$false] %s1212_s10 }
  0x8e   : > { %985 = vmatpush3.bf16.msra.mxu1 %v984_v24  ;;  %v1002_v48 = vpack.c.bf16 %v480_v47, %v479_v46  ;;  %v825_v49 = vld [vmem:[%s356_s17] ss:$0 sm:$0xff]  ;;  %s1214_s15 = scalar_lea.vmem %s1213_s10, 64  ;;  %p1215_p6 = scmp.lt.s32.totalorder %s1641_s28, %s1213_s10 }
  0x8f   : > { %986 = vmatprep.subr.bf16.mxu1 %v1308_v0  ;;  %v827_v61 = vld [vmem:[%s1693_s3] ss:$0 sm:$0xff]  ;;  %p1211_p4 = pneg %p1210_p0  ;;  %p1216_p2 = scmp.lt.s32.totalorder %s1214_s15, %s1208_s14 }
  0x90   : > { %976 = vmatpush3.bf16.msra.mxu0 %v975_v25  ;;  %v828_v63 = vld [vmem:[%s1694_s4] ss:$0 sm:$0xff] }
  0x91   : > { %977 = vmatprep.subr.bf16.mxu0 %v1308_v0  ;;  %p1217_p10 = por %p1216_p2, %p1215_p6 }
  0x92   : > { %988 = vmatpush3.bf16.msra.mxu1 %v987_v31 }
  0x93   : > { %989 = vmatprep.subr.bf16.mxu1 %v1308_v0  ;;  %p1218_p13 = pnand %p1217_p10, %p1211_p4 }
  0x94   : > { %979 = vmatpush3.bf16.msra.mxu0 %v978_v32 }
  0x95   : > { %1004 = vmatprep.subr.bf16.mxu0 %v1308_v0 }
  0x96   : > { %991 = vmatpush3.bf16.msra.mxu1 %v990_v36 }
  0x97   : > { %896 = vmatmul.mubr.msk.f32.vlgmr.msra.gmra.mrb[0].mxu0 %vm392_vm1, %v391_v35  ;;  %992 = vmatprep.subr.bf16.mxu1 %v1308_v0 }
  0x98   : > { %1006 = vmatpush3.bf16.msra.mxu0 %v981_v19  ;;  %965 = vmatprep.mubr.msk.f32.mxu0 %vm1309_vm0, %v1310_v1 }
  0x99   : > { %1007 = vmatprep.subr.bf16.mxu0 %v1308_v0 }
  0x9a   : > { %994 = vmatpush3.bf16.msra.mxu1 %v993_v39 }
  0x9b   : > { %995 = vmatprep.subr.bf16.mxu1 %v1308_v0 }
  0x9c   : > { %1009 = vmatpush3.bf16.msra.mxu0 %v984_v24 }
  0x9d   : > { %1010 = vmatprep.subr.bf16.mxu0 %v1308_v0 }
  0x9e   : > { %997 = vmatpush3.bf16.msra.mxu1 %v996_v42 }
  0x9f   : > { %998 = vmatprep.subr.bf16.mxu1 %v1308_v0 }
  0xa0   : > { %1012 = vmatpush3.bf16.msra.mxu0 %v987_v31 }
  0xa1   : > { %1013 = vmatprep.subr.bf16.mxu0 %v1308_v0 }
  0xa2   : > { %1000 = vmatpush3.bf16.msra.mxu1 %v999_v45 }
  0xa3   : > { %1001 = vmatprep.subr.bf16.mxu1 %v1308_v0 }
  0xa4   : > { %1015 = vmatpush3.bf16.msra.mxu0 %v990_v36 }
  0xa5   : > { %1016 = vmatprep.subr.bf16.mxu0 %v1308_v0 }
  0xa6   : > { %1003 = vmatpush3.bf16.msra.mxu1 %v1002_v48 }
  0xa8   : > { %1018 = vmatpush3.bf16.msra.mxu0 %v993_v39 }
  0xa9   : > { %1019 = vmatprep.subr.bf16.mxu0 %v1308_v0 }
  0xac   : > { %1021 = vmatpush3.bf16.msra.mxu0 %v996_v42 }
  0xad   : > { %1022 = vmatprep.subr.bf16.mxu0 %v1308_v0 }
  0xb0   : > { %1024 = vmatpush3.bf16.msra.mxu0 %v999_v45 }
  0xb1   : > { %1025 = vmatprep.subr.bf16.mxu0 %v1308_v0 }
  0xb4   : > { %1027 = vmatpush3.bf16.msra.mxu0 %v1002_v48 }
 0x16a   : > { %v461_v50 = vpop.f32.mrb[0].mxu0 }
 0x16b   : > { %v462_v51 = vadd.f32 %v825_v49, %v461_v50  ;;  %v897_v52 = vpop.f32.mrb[1].mxu0 }
 0x16d   : > { %931 = vmatmul.mubr.f32.vlgmr.msra.gmra.mrb[0].mxu1 %v462_v51 }
 0x240   : > { %v547_v53 = vpop.f32.mrb[0].mxu1 }
 0x241   : > { %v551_v54 = vsub.f32 %v462_v51, %v547_v53  ;;  %v932_v55 = vpop.f32.mrb[1].mxu1 }
 0x243   : > { %v552_v56 = vmul.f32 %v551_v54, %v551_v54 }
 0x245   : > { %966 = vmatmul.mubr.f32.vlgmr.msra.gmra.mrb[2].mxu0 %v552_v56 }
 0x318   : > { %v619_v57 = vpop.f32.mrb[2].mxu0 }
 0x319   : > { %v620_v58 = vadd.f32 1e-05, %v619_v57  ;;  %v967_v59 = vpop.f32.mrb[3].mxu0 }
 0x31b   : > { %1118 = vrsqrt.f32 %v620_v58 }
 0x325   : > { %v1119_v60 = vpop.eup %1118 }
 0x326   : > { %v624_v62 = vmul.f32 %v1119_v60, %v551_v54 }
 0x328   : > { %v632_v0 = vmul.f32 %v827_v61, %v624_v62 }
 0x32a   : > { %v640_v1 = vadd.f32 %v828_v63, %v632_v0 }
 0x32c   : > { %v648_v2 = vrot.slane %v640_v1, %v1596_v23 }
 0x32e   : > { %v649_v3 = vcombine.high %v648_v2, %v648_v2  ;;  %829 = vst.sshfl [vmem:[%s352_s13] sm:$0x1 pattern:$0x73625140] %v648_v2 }
 0x330   : > { %830 = vst.sshfl [vmem:[%s352_s13 + $0x1] sm:$0x1 pattern:$0x73625140] %v649_v3 }
 0x331   : > { %1221 = shalt.err (!%p1218_p13)
}
 0x332   : > { %s1222_s20 = scalar_lea.hbm %s1639_s9, 32  ;;  %s1226_s7 = scalar_lea.hbm %s1696_s6, 64 }
 0x333   : > { %p1223_p5 = scmp.ne.s32.totalorder %s1639_s9, %s1222_s20  ;;  %p1227_p9 = scmp.lt.u32.totalorder %s1639_s9, %s1696_s6 }
 0x334   : > { %p1228_p1 = scmp.lt.u32.totalorder %s1226_s7, %s1222_s20  ;;  %p1230_p7 = scmp.lt.u32.totalorder %s1222_s20, %s1639_s9 }
 0x335   : > { %p1224_p12 = pnand %p1223_p5, %p1734_p8 }
 0x336   : > { %p1229_p3 = por %p1228_p1, %p1227_p9 }
 0x337   : > { %p1225_p11 = pneg %p1224_p12 }
 0x338   : > { %p1231_p0 = por %p1230_p7, %p1229_p3 }
 0x33a   : > { %p1232_p4 = pnand %p1231_p0, %p1225_p11 }
 0x33c   : > { %1235 = shalt.err (!%p1232_p4)
}
 0x33d   : > { %s1313_s0 = smov 16   ;;  %s1314_s5 = smov 32  }
 0x33e   : > { %s1315_s29 = smov 1  }
 0x33f   : > { %1036 = dma.vmem_to_hbm [thread:$0]  (%p1734_p8), %s1641_s28, 32, %s1639_s9, %s669_s24, %s1313_s0, %s1314_s5, %s1315_s29  }
 0x340 PF: > { %s1735_s16 = sld [smem:[#allocation13_spill]]  ;;  %s1736_s18 = sld [smem:[#allocation15_spill]] }
 0x341   : > { %p1738_p2 = scmp.ge.s32.totalorder %s1298_s26, 2 }
 0x346   : > { %s699_s13 = sand.u32 1, %s1735_s16   ;;  %p1737_p6 = scmp.ne.s32.totalorder %s1736_s18, 0 }
 0x347   : > { %s700_s23 = scalar_lea.sflag [#allocation4], %s699_s13 }
 0x348   : > { %p1050_p10 = pnand %p1738_p2, %p1737_p6 }
 0x34a   : > { %1273 = dma.done.wait (!%p1050_p10), %s700_s23, 32  }
 0x34b   : > { %1275 = vsyncadd (!%p1050_p10), %s700_s23, 4294967264  ;;  %s25_s26 = sadd.s32 1, %s1298_s26   ;;  %s1739_s11 = sld [smem:[#allocation14_spill]] }
 0x34c   : > { %p22_p13 = scmp.ge.s32.totalorder %s25_s26, 4   ;;  %s1740_s23 = sld [smem:[#allocation17_spill]] }
 0x34d   : > { %s1741_s8 = sld [smem:[#allocation16_spill]]  ;;  %s1742_s21 = smov %s1282_s22 }
 0x34e   : > { %s1744_s24 = smov %s1294_s25  ;;  %24 = sbr.rel (!%p22_p13) target bundleno = 11 (0xb), region = 109 }
 0x351   : > { %s1743_s22 = smov %s1739_s11 }
 0x353   : > { %s1745_s25 = smov %s1741_s8 }
 0x355   :  { %705 = vsyncpa [#allocation3], 1 }
 0x356   :  { %707 = vsyncpa [#allocation3 + $0x1], 1 }
 0x357   :  { %708 = vsyncpa [#allocation6], 1 }
 0x358   :  { %710 = vsyncpa [#allocation6 + $0x1], 1 }
 0x359   :  { %711 = vsyncpa [#allocation4], 1 }
 0x35a   :  { %713 = vsyncpa [#allocation4 + $0x1], 1 }

</bundles_post_ra>
